<compile_context>
chip_gen: v7x
topology: tpu7x:2x2x1
jax: 0.10.0
libtpu: 0.0.40
codegen_flags: <defaults>
</compile_context>

<pallas_src>
import numpy as np
import jax
import jax.numpy as jnp
from jax.experimental import pallas as pl
from jax.experimental.pallas import tpu as pltpu

ETA = 1e-6          # Constants.eta
NEG_BIG = -1e30     # bias for padded softmax lanes -> exp underflows to exactly 0


def _round_up(x, m):
    return ((x + m - 1) // m) * m


def enc_fnn_kernel(x_ref, w1_ref, b1_ref, wh_ref, bh_ref, out_ref, acc_ref):
    """grid = (batch_tiles [parallel], k_tiles [arbitrary, reduction over D])."""
    k = pl.program_id(1)

    @pl.when(k == 0)
    def _():
        acc_ref[...] = jnp.zeros_like(acc_ref)

    # Layer 1 partial product: (TB, TK) @ (TK, H), f32 accumulation.
    acc_ref[...] += jnp.dot(x_ref[...], w1_ref[...],
                            preferred_element_type=jnp.float32)

    @pl.when(k == pl.num_programs(1) - 1)
    def _():
        h = jnp.maximum(acc_ref[...] + b1_ref[...], 0.0)

        # Fused mu/lv heads: single (TB, H) @ (H, 2*O_pad) matmul.
        # (N=128 on the first matmul only half-fills v6e/v7x's 256-wide MXU;
        #  deliberate no-op: the kernel is HBM-bound, MXU is not the binding slot.)
        z = jnp.dot(h, wh_ref[...], preferred_element_type=jnp.float32) + bh_ref[...]
        o_pad = out_ref.shape[-1] // 2
        mu = z[:, :o_pad]
        lv = z[:, o_pad:]

        # Numerically stable softmax. Padded lanes carry bias = -1e30, so
        # exp(pad - max) == 0 and they don't perturb max/sum.
        lv = lv - jnp.max(lv, axis=-1, keepdims=True)
        e = jnp.exp(lv)
        sm = e * pl.reciprocal(jnp.sum(e, axis=-1, keepdims=True), approx=False)

        out_ref[:, :o_pad] = mu.astype(out_ref.dtype)
        out_ref[:, o_pad:] = (sm + ETA).astype(out_ref.dtype)


def prepare_params(params, *, tk=2048, use_bf16_inputs=False):
    """One-time (cache outside the hot path) weight prep: fuse heads, pad, cast."""
    w1, b1, wmu, bmu, wlv, blv = params
    D, H = w1.shape
    O = wmu.shape[1]
    O_pad = _round_up(O, 128)                      # lane-dense output width
    TK = int(min(tk, _round_up(D, 128)))           # K tile, multiple of 128
    D_pad = _round_up(D, TK)
    in_dtype = jnp.bfloat16 if use_bf16_inputs else jnp.float32

    # First-layer weight: pad reduction dim with zeros, optional bf16 storage.
    w1_p = jnp.zeros((D_pad, H), in_dtype).at[:D, :].set(w1.astype(in_dtype))
    b1_p = b1.astype(jnp.float32).reshape(1, H)

    # Fused + lane-padded heads (kept f32 so the -1e30 pad bias survives).
    w_heads = jnp.zeros((H, 2 * O_pad), jnp.float32)
    w_heads = w_heads.at[:, :O].set(wmu).at[:, O_pad:O_pad + O].set(wlv)
    b_heads = jnp.zeros((1, 2 * O_pad), jnp.float32)
    b_heads = b_heads.at[:, O_pad + O:].set(NEG_BIG)   # kill padded softmax lanes
    b_heads = b_heads.at[:, :O].set(bmu).at[:, O_pad:O_pad + O].set(blv)

    meta = dict(D=D, D_pad=D_pad, TK=TK, H=H, O=O, O_pad=O_pad,
                in_dtype=in_dtype)
    return (w1_p, b1_p, w_heads, b_heads), meta


def enc_fnn_forward(x, prepared, meta, *, tb=512):
    """x: (B, *data_dim). Returns (mu, softmax(logvar)+eta), each (B, out_dim) f32."""
    w1_p, b1_p, w_heads, b_heads = prepared
    D, D_pad, TK = meta["D"], meta["D_pad"], meta["TK"]
    H, O, O_pad = meta["H"], meta["O"], meta["O_pad"]
    in_dtype = meta["in_dtype"]
    itemsize = jnp.dtype(in_dtype).itemsize

    B = x.shape[0]
    x_flat = x.reshape(B, -1).astype(in_dtype)     # glue: flatten (mirrors .view)
    if D_pad != D:
        x_flat = jnp.pad(x_flat, ((0, 0), (0, D_pad - D)))

    # ---- batch tiling ----
    # bf16 packs two rows per sublane -> 16-align; f32 -> 8-align.
    align = 16 if in_dtype == jnp.bfloat16 else 8
    # Cap TB at ceil(B/2) so the parallel axis has >=2 steps when B allows
    # (lets Mosaic shard the batch axis across both v7x TensorCores).
    TB = int(min(tb, max(align, _round_up(-(-B // 2), align))))
    B_pad = _round_up(B, TB)
    if B_pad != B:
        x_flat = jnp.pad(x_flat, ((0, B_pad - B), (0, 0)))

    num_b = B_pad // TB
    num_k = D_pad // TK
    grid = (num_b, num_k)

    # Single-buffer operands whose block index never changes across the grid.
    invariant = pl.Buffered(1)
    w1_mode = pl.Buffered(1) if num_k == 1 else pl.Buffered(2)

    # Explicit VMEM budget (double-buffered x/out, w1 per mode, scratch, heads).
    vmem_est = (2 * TB * TK * itemsize
                + (1 if num_k == 1 else 2) * TK * H * itemsize
                + (8 * 128 + 8 * 2 * O_pad) * 4
                + H * 2 * O_pad * 4
                + 2 * TB * 2 * O_pad * 4
                + TB * H * 4)
    vmem_limit = min(max(int(1.5 * vmem_est) + (4 << 20), 32 << 20), 56 << 20)

    cost = pl.CostEstimate(
        flops=2 * B_pad * D_pad * H + 2 * B_pad * H * 2 * O_pad,
        transcendentals=B_pad * O_pad,
        bytes_accessed=(B_pad * D_pad * itemsize
                        + (num_b if num_k > 1 else 1) * D_pad * H * itemsize
                        + 4 * (H + H * 2 * O_pad + 2 * O_pad)
                        + 4 * B_pad * 2 * O_pad),
    )

    out_full = pl.pallas_call(
        enc_fnn_kernel,
        grid=grid,
        in_specs=[
            pl.BlockSpec((TB, TK), lambda i, k: (i, k)),                    # x
            pl.BlockSpec((TK, H), lambda i, k: (k, 0),
                         pipeline_mode=w1_mode),                            # w1
            pl.BlockSpec((1, H), lambda i, k: (0, 0),
                         pipeline_mode=invariant),                          # b1
            pl.BlockSpec((H, 2 * O_pad), lambda i, k: (0, 0),
                         pipeline_mode=invariant),                          # fused head W
            pl.BlockSpec((1, 2 * O_pad), lambda i, k: (0, 0),
                         pipeline_mode=invariant),                          # fused head b
        ],
        out_specs=pl.BlockSpec((TB, 2 * O_pad), lambda i, k: (i, 0)),       # mu | softmax
        out_shape=jax.ShapeDtypeStruct((B_pad, 2 * O_pad), jnp.float32),
        scratch_shapes=[pltpu.VMEM((TB, H), jnp.float32)],                  # layer-1 acc
        compiler_params=pltpu.CompilerParams(
            dimension_semantics=("parallel", "arbitrary"),
            vmem_limit_bytes=vmem_limit),
        cost_estimate=cost,
    )(x_flat, w1_p, b1_p, w_heads, b_heads)

    # glue: strip batch padding, split fused output, strip lane padding.
    mu = out_full[:B, :O]
    lv = out_full[:B, O_pad:O_pad + O]
    return mu, lv


def init_params(key, data_dim, latent_dim, latent_private=None, hidden_dim=128):
    """Deterministic synthetic parameters matching Enc_FNN.__init__ shapes."""
    in_feats = int(np.prod(data_dim))
    out_dim = latent_dim + (latent_private if latent_private is not None else 0)
    ks = jax.random.split(key, 6)
    s1 = 1.0 / np.sqrt(in_feats)
    s2 = 1.0 / np.sqrt(hidden_dim)
    w1 = jax.random.uniform(ks[0], (in_feats, hidden_dim), jnp.float32, -s1, s1)
    b1 = jax.random.uniform(ks[1], (1, hidden_dim), jnp.float32, -s1, s1)
    wmu = jax.random.uniform(ks[2], (hidden_dim, out_dim), jnp.float32, -s2, s2)
    bmu = jax.random.uniform(ks[3], (1, out_dim), jnp.float32, -s2, s2)
    wlv = jax.random.uniform(ks[4], (hidden_dim, out_dim), jnp.float32, -s2, s2)
    blv = jax.random.uniform(ks[5], (1, out_dim), jnp.float32, -s2, s2)
    return (w1, b1, wmu, bmu, wlv, blv)


def reference_forward(x, params):
    """Pure-JAX reference mirroring the PyTorch forward."""
    w1, b1, wmu, bmu, wlv, blv = params
    B = x.shape[0]
    xf = x.reshape(B, -1).astype(jnp.float32)
    h = jax.nn.relu(xf @ w1 + b1)
    mu = h @ wmu + bmu
    lv = jax.nn.softmax(h @ wlv + blv, axis=-1) + ETA
    return mu, lv


if __name__ == "__main__":
    key = jax.random.PRNGKey(0)
    k_x, k_p, k_x2 = jax.random.split(key, 3)

    # Small shapes consistent with the module: data_dim = [4,16,16], batch=2
    data_dim = (4, 16, 16)
    latent_dim = 8
    batch = 2

    x = jax.random.normal(k_x, (batch,) + data_dim, dtype=jnp.float32)
    params = init_params(k_p, data_dim, latent_dim)
    mu_ref, lv_ref = reference_forward(x, params)

    # Hoisted, cacheable weight prep (fused heads, padding, casts) -- done once.
    prepared, meta = prepare_params(params)

    mu, lv = enc_fnn_forward(x, prepared, meta)
    jax.block_until_ready((mu, lv))
    np.testing.assert_allclose(np.asarray(mu), np.asarray(mu_ref), rtol=1e-5, atol=1e-5)
    np.testing.assert_allclose(np.asarray(lv), np.asarray(lv_ref), rtol=1e-5, atol=1e-5)

    # Batch-tiled path (>=2 parallel grid steps) on a larger batch.
    x2 = jax.random.normal(k_x2, (64,) + data_dim, dtype=jnp.float32)
    mu2_ref, lv2_ref = reference_forward(x2, params)
    mu2, lv2 = enc_fnn_forward(x2, prepared, meta, tb=32)
    jax.block_until_ready((mu2, lv2))
    np.testing.assert_allclose(np.asarray(mu2), np.asarray(mu2_ref), rtol=1e-5, atol=1e-5)
    np.testing.assert_allclose(np.asarray(lv2), np.asarray(lv2_ref), rtol=1e-5, atol=1e-5)

    # K-reduction-tiled path (tk=256 over D=1024 -> 4 K steps with accumulator).
    prep_k, meta_k = prepare_params(params, tk=256)
    mu3, lv3 = enc_fnn_forward(x2, prep_k, meta_k, tb=32)
    jax.block_until_ready((mu3, lv3))
    np.testing.assert_allclose(np.asarray(mu3), np.asarray(mu2_ref), rtol=1e-5, atol=1e-5)
    np.testing.assert_allclose(np.asarray(lv3), np.asarray(lv2_ref), rtol=1e-5, atol=1e-5)

    # bf16-storage / f32-accumulate path (HBM bandwidth win on all generations).
    prep_bf, meta_bf = prepare_params(params, use_bf16_inputs=True)
    mu4, lv4 = enc_fnn_forward(x2, prep_bf, meta_bf)
    jax.block_until_ready((mu4, lv4))
    np.testing.assert_allclose(np.asarray(mu4), np.asarray(mu2_ref), rtol=5e-2, atol=5e-2)
    np.testing.assert_allclose(np.asarray(lv4), np.asarray(lv2_ref), rtol=5e-2, atol=5e-2)

    print("KERNEL_OK")
</pallas_src>

<mosaic_0001>
module attributes {stable_mosaic.version = 11 : i64} {
  func.func @enc_fnn_kernel(%arg0: i32, %arg1: i32, %arg2: memref<8x1024xf32, #tpu.memory_space<vmem>>, %arg3: memref<1024x128xf32, #tpu.memory_space<vmem>>, %arg4: memref<1x128xf32, #tpu.memory_space<vmem>>, %arg5: memref<128x256xf32, #tpu.memory_space<vmem>>, %arg6: memref<1x256xf32, #tpu.memory_space<vmem>>, %arg7: memref<8x256xf32, #tpu.memory_space<vmem>>, %arg8: memref<8x128xf32, #tpu.memory_space<vmem>>) attributes {dimension_semantics = [#tpu.dimension_semantics<parallel>, #tpu.dimension_semantics<arbitrary>], iteration_bounds = array<i64: 1, 1>, scalar_prefetch = 0 : i64, scratch_operands = 1 : i64, tpu.core_type = #tpu.core_type<tc>, window_params = [{transform_indices = @transform_0, window_bounds = array<i64: 8, 1024>}, {pipeline_mode = #tpu.pipeline_mode<synchronous>, transform_indices = @transform_1, window_bounds = array<i64: 1024, 128>}, {pipeline_mode = #tpu.pipeline_mode<synchronous>, transform_indices = @transform_2, window_bounds = array<i64: 1, 128>}, {pipeline_mode = #tpu.pipeline_mode<synchronous>, transform_indices = @transform_3, window_bounds = array<i64: 128, 256>}, {pipeline_mode = #tpu.pipeline_mode<synchronous>, transform_indices = @transform_4, window_bounds = array<i64: 1, 256>}, {transform_indices = @transform_5, window_bounds = array<i64: 8, 256>}]} {
    %c0_i32 = arith.constant 0 : i32
    %0 = arith.cmpi eq, %arg1, %c0_i32 : i32
    %1 = arith.extui %0 : i1 to i32
    %c0_i32_0 = arith.constant 0 : i32
    %2 = arith.cmpi ne, %1, %c0_i32_0 : i32
    scf.if %2 {
      %cst_10 = arith.constant 0.000000e+00 : f32
      %12 = vector.broadcast %cst_10 : f32 to vector<8x128xf32>
      %c0_11 = arith.constant 0 : index
      %c0_12 = arith.constant 0 : index
      %13 = vector.load %arg8[%c0_11, %c0_12] : memref<8x128xf32, #tpu.memory_space<vmem>>, vector<8x128xf32>
      tpu.vector_store %arg8[%c0_11, %c0_12], %12 {strides = array<i32>} : memref<8x128xf32, #tpu.memory_space<vmem>>, vector<8x128xf32>,
    } else {
    }
    %c0 = arith.constant 0 : index
    %c0_1 = arith.constant 0 : index
    %3 = vector.load %arg8[%c0, %c0_1] : memref<8x128xf32, #tpu.memory_space<vmem>>, vector<8x128xf32>
    %c0_2 = arith.constant 0 : index
    %c0_3 = arith.constant 0 : index
    %4 = vector.load %arg2[%c0_2, %c0_3] : memref<8x1024xf32, #tpu.memory_space<vmem>>, vector<8x1024xf32>
    %c0_4 = arith.constant 0 : index
    %c0_5 = arith.constant 0 : index
    %5 = vector.load %arg3[%c0_4, %c0_5] : memref<1024x128xf32, #tpu.memory_space<vmem>>, vector<1024x128xf32>
    %cst = arith.constant dense<0.000000e+00> : vector<8x128xf32>
    %6 = tpu.matmul %4, %5, %cst {dimension_numbers = #tpu.dot_dimension_numbers<[1], [0], [0], [1], [0, 0, 1, 1], [], []>} : vector<8x1024xf32>, vector<1024x128xf32>, vector<8x128xf32> -> vector<8x128xf32>
    %7 = arith.addf %3, %6 : vector<8x128xf32>
    %c0_6 = arith.constant 0 : index
    %c0_7 = arith.constant 0 : index
    %8 = vector.load %arg8[%c0_6, %c0_7] : memref<8x128xf32, #tpu.memory_space<vmem>>, vector<8x128xf32>
    tpu.vector_store %arg8[%c0_6, %c0_7], %7 {strides = array<i32>} : memref<8x128xf32, #tpu.memory_space<vmem>>, vector<8x128xf32>,
    %c0_i32_8 = arith.constant 0 : i32
    %9 = arith.cmpi eq, %arg1, %c0_i32_8 : i32
    %10 = arith.extui %9 : i1 to i32
    %c0_i32_9 = arith.constant 0 : i32
    %11 = arith.cmpi ne, %10, %c0_i32_9 : i32
    scf.if %11 {
      %c0_10 = arith.constant 0 : index
      %c0_11 = arith.constant 0 : index
      %12 = vector.load %arg8[%c0_10, %c0_11] : memref<8x128xf32, #tpu.memory_space<vmem>>, vector<8x128xf32>
      %c0_12 = arith.constant 0 : index
      %c0_13 = arith.constant 0 : index
      %13 = vector.load %arg4[%c0_12, %c0_13] : memref<1x128xf32, #tpu.memory_space<vmem>>, vector<1x128xf32>
      %14 = vector.broadcast %13 : vector<1x128xf32> to vector<8x128xf32>
      %15 = arith.addf %12, %14 : vector<8x128xf32>
      %cst_14 = arith.constant 0.000000e+00 : f32
      %16 = vector.broadcast %cst_14 : f32 to vector<8x128xf32>
      %17 = arith.maximumf %15, %16 : vector<8x128xf32>
      %c0_15 = arith.constant 0 : index
      %c0_16 = arith.constant 0 : index
      %18 = vector.load %arg5[%c0_15, %c0_16] : memref<128x256xf32, #tpu.memory_space<vmem>>, vector<128x256xf32>
      %cst_17 = arith.constant dense<0.000000e+00> : vector<8x256xf32>
      %19 = tpu.matmul %17, %18, %cst_17 {dimension_numbers = #tpu.dot_dimension_numbers<[1], [0], [0], [1], [0, 0, 1, 1], [], []>} : vector<8x128xf32>, vector<128x256xf32>, vector<8x256xf32> -> vector<8x256xf32>
      %c0_18 = arith.constant 0 : index
      %c0_19 = arith.constant 0 : index
      %20 = vector.load %arg6[%c0_18, %c0_19] : memref<1x256xf32, #tpu.memory_space<vmem>>, vector<1x256xf32>
      %21 = vector.broadcast %20 : vector<1x256xf32> to vector<8x256xf32>
      %22 = arith.addf %19, %21 : vector<8x256xf32>
      %23 = vector.extract_strided_slice %22 {offsets = [0, 0], sizes = [8, 128], strides = [1, 1]} : vector<8x256xf32> to vector<8x128xf32>
      %24 = vector.extract_strided_slice %22 {offsets = [0, 128], sizes = [8, 128], strides = [1, 1]} : vector<8x256xf32> to vector<8x128xf32>
      %cst_20 = arith.constant dense<0xFF800000> : vector<8xf32>
      %25 = vector.multi_reduction <maximumf>, %24, %cst_20 [1] : vector<8x128xf32> to vector<8xf32>
      %26 = vector.shape_cast %25 : vector<8xf32> to vector<8x1xf32>
      %27 = vector.broadcast %26 : vector<8x1xf32> to vector<8x128xf32>
      %28 = arith.subf %24, %27 : vector<8x128xf32>
      %29 = math.exp %28 : vector<8x128xf32>
      %cst_21 = arith.constant dense<0.000000e+00> : vector<8xf32>
      %30 = vector.multi_reduction <add>, %29, %cst_21 [1] : vector<8x128xf32> to vector<8xf32>
      %31 = vector.shape_cast %30 : vector<8xf32> to vector<8x1xf32>
      %32 = tpu.reciprocal %31 : vector<8x1xf32> -> vector<8x1xf32>
      %33 = vector.broadcast %32 : vector<8x1xf32> to vector<8x128xf32>
      %34 = arith.mulf %29, %33 : vector<8x128xf32>
      %c0_22 = arith.constant 0 : index
      %c0_23 = arith.constant 0 : index
      %35 = vector.load %arg7[%c0_22, %c0_23] : memref<8x256xf32, #tpu.memory_space<vmem>>, vector<8x128xf32>
      tpu.vector_store %arg7[%c0_22, %c0_23], %23 {strides = array<i32>} : memref<8x256xf32, #tpu.memory_space<vmem>>, vector<8x128xf32>,
      %cst_24 = arith.constant 9.99999997E-7 : f32
      %36 = vector.broadcast %cst_24 : f32 to vector<8x128xf32>
      %37 = arith.addf %34, %36 : vector<8x128xf32>
      %c0_25 = arith.constant 0 : index
      %c128 = arith.constant 128 : index
      %38 = vector.load %arg7[%c0_25, %c128] : memref<8x256xf32, #tpu.memory_space<vmem>>, vector<8x128xf32>
      tpu.vector_store %arg7[%c0_25, %c128], %37 {strides = array<i32>} : memref<8x256xf32, #tpu.memory_space<vmem>>, vector<8x128xf32>,
    } else {
    }
    return
  }
  func.func @transform_0(%arg0: i32, %arg1: i32) -> (i32, i32) {
    %c0_i32 = arith.constant 0 : i32
    return %arg0, %arg1 : i32, i32
  }
  func.func @transform_1(%arg0: i32, %arg1: i32) -> (i32, i32) {
    %c0_i32 = arith.constant 0 : i32
    %c0_i32_0 = arith.constant 0 : i32
    return %arg1, %c0_i32 : i32, i32
  }
  func.func @transform_2(%arg0: i32, %arg1: i32) -> (i32, i32) {
    %c0_i32 = arith.constant 0 : i32
    %c0_i32_0 = arith.constant 0 : i32
    %c0_i32_1 = arith.constant 0 : i32
    return %c0_i32, %c0_i32_0 : i32, i32
  }
  func.func @transform_3(%arg0: i32, %arg1: i32) -> (i32, i32) {
    %c0_i32 = arith.constant 0 : i32
    %c0_i32_0 = arith.constant 0 : i32
    %c0_i32_1 = arith.constant 0 : i32
    return %c0_i32, %c0_i32_0 : i32, i32
  }
  func.func @transform_4(%arg0: i32, %arg1: i32) -> (i32, i32) {
    %c0_i32 = arith.constant 0 : i32
    %c0_i32_0 = arith.constant 0 : i32
    %c0_i32_1 = arith.constant 0 : i32
    return %c0_i32, %c0_i32_0 : i32, i32
  }
  func.func @transform_5(%arg0: i32, %arg1: i32) -> (i32, i32) {
    %c0_i32 = arith.constant 0 : i32
    %c0_i32_0 = arith.constant 0 : i32
    return %arg0, %c0_i32 : i32, i32
  }
}

</mosaic_0001>

<bundles_post_ra>
// kernel: tpu_custom_call.1
= control target key start
LH: loop header
LB: loop body
LE: loop exit
PB: predicated region body
PF: predicated region fallthrough
CT: control target
= control target key end

     0   :  { %10 = vsyncpa [#allocation4], 0  ;;  %s1141_s0 = inlined_call_operand.hbm [shape: f32[8,1024], index: 0, kind: input, shape index: {}]   ;;  %s1142_s1 = inlined_call_operand.hbm [shape: f32[1024,128], index: 1, kind: input, shape index: {}]   ;;  %s1143_s2 = inlined_call_operand.vmem [shape: f32[1,128], index: 2, kind: input, shape index: {}]   ;;  %s1144_s3 = inlined_call_operand.hbm [shape: f32[128,256], index: 3, kind: input, shape index: {}]   ;;  %s1145_s4 = inlined_call_operand.vmem [shape: f32[1,256], index: 4, kind: input, shape index: {}]   ;;  %s1146_s5 = inlined_call_operand.hbm [shape: f32[8,256], index: 5, kind: output, shape index: {}]  }
   0x1   :  { %11 = vsyncpa [#allocation7], 0 }
   0x2   :  { %12 = vsyncpa [#allocation5], 0  ;;  %s1048_s18 = smov [#allocation6]   ;;  %s954_s22 = scalar_lea.hbm %s1142_s1, 16384 }
   0x3   :  { %s28_s19 = sshll.u32 %s1048_s18, 4  ;;  %p955_p0 = scmp.ne.s32.totalorder %s1142_s1, %s954_s22  ;;  %s29_s19 = int_to_ptr.vmem [resolvable:$true] %s28_s19 }
   0x4   :  { %p958_p1 = scmp.lt.u32.totalorder %s954_s22, %s1142_s1 }
   0x6   :  { %p960_p2 = pnand %p958_p1, %p955_p0 }
   0x8   :  { %963 = shalt.err (!%p960_p2)
}
   0x9   :  { %s964_s27 = scalar_lea.vmem %s29_s19, 16384  ;;  %p969_p4 = scmp.lt.s32.totalorder %s29_s19, %s29_s19 }
   0xa   :  { %p965_p3 = scmp.ne.s32.totalorder %s29_s19, %s964_s27  ;;  %p970_p5 = scmp.lt.s32.totalorder %s964_s27, %s964_s27 }
   0xc   :  { %p971_p6 = por %p970_p5, %p969_p4 }
   0xe   :  { %p972_p7 = pnand %p971_p6, %p965_p3 }
  0x10   :  { %975 = shalt.err (!%p972_p7)
}
  0x11   :  { %s1049_s28 = smov 128   ;;  %s1050_s29 = smov 8  }
  0x12   :  { %34 = dma.hbm_to_vmem [thread:$0]  %s1142_s1, 16384, %s29_s19, [#allocation7], %s1049_s28, %s1049_s28, %s1050_s29  }
  0x13   :  { %s1051_s7 = smov [#allocation3]   ;;  %s1052_s9 = smov [#allocation8]  }
  0x14   :  { %s19_s8 = sshll.u32 %s1051_s7, 4  ;;  %s42_s10 = sshll.u32 %s1052_s9, 4  ;;  %s20_s8 = int_to_ptr.vmem [resolvable:$true] %s19_s8  ;;  %s43_s10 = int_to_ptr.vmem [resolvable:$true] %s42_s10 }
  0x15   :  { %s976_s13 = scalar_lea.hbm %s1141_s0, 1024 }
  0x16   :  { %p977_p8 = scmp.ne.s32.totalorder %s1141_s0, %s976_s13  ;;  %p980_p9 = scmp.lt.u32.totalorder %s976_s13, %s1141_s0 }
  0x18   :  { %p982_p10 = pnand %p980_p9, %p977_p8 }
  0x1a   :  { %985 = shalt.err (!%p982_p10)
}
  0x1b   :  { %s986_s1 = scalar_lea.vmem %s20_s8, 1024  ;;  %p991_p12 = scmp.lt.s32.totalorder %s20_s8, %s20_s8 }
  0x1c   :  { %p987_p11 = scmp.ne.s32.totalorder %s20_s8, %s986_s1  ;;  %p992_p13 = scmp.lt.s32.totalorder %s986_s1, %s986_s1 }
  0x1e   :  { %p993_p0 = por %p992_p13, %p991_p12 }
  0x20   :  { %p994_p1 = pnand %p993_p0, %p987_p11 }
  0x22   :  { %997 = shalt.err (!%p994_p1)
}
  0x23   :  { %22 = dma.hbm_to_vmem [thread:$0]  %s1141_s0, 1024, %s20_s8, [#allocation4]  }
  0x24   :  { %s998_s22 = scalar_lea.hbm %s1144_s3, 4096 }
  0x25   :  { %p999_p2 = scmp.ne.s32.totalorder %s1144_s3, %s998_s22  ;;  %p1002_p3 = scmp.lt.u32.totalorder %s998_s22, %s1144_s3 }
  0x27   :  { %p1004_p4 = pnand %p1002_p3, %p999_p2 }
  0x29   :  { %1007 = shalt.err (!%p1004_p4)
}
  0x2a   :  { %s1008_s27 = scalar_lea.vmem %s43_s10, 4096  ;;  %p1013_p6 = scmp.lt.s32.totalorder %s43_s10, %s43_s10 }
  0x2b   :  { %p1009_p5 = scmp.ne.s32.totalorder %s43_s10, %s1008_s27  ;;  %p1014_p7 = scmp.lt.s32.totalorder %s1008_s27, %s1008_s27 }
  0x2d   :  { %p1015_p8 = por %p1014_p7, %p1013_p6 }
  0x2f   :  { %p1016_p9 = pnand %p1015_p8, %p1009_p5 }
  0x31   :  { %1019 = shalt.err (!%p1016_p9)
}
  0x32   :  { %s1053_s0 = smov 256   ;;  %s1054_s28 = smov 16  }
  0x33   :  { %48 = dma.hbm_to_vmem [thread:$0]  %s1144_s3, 4096, %s43_s10, [#allocation7], %s1053_s0, %s1053_s0, %s1054_s28  }
  0x34   :  { %1042 = dma.done.wait [#allocation4], 1024  }
  0x35   :  { %1043 = vsyncadd [#allocation4], 4294966272 }
  0x36   :  { %1044 = dma.done.wait [#allocation7], 20480  }
  0x37   :  { %1045 = vsyncadd [#allocation7], 4294946816  ;;  %v90_v0 = vld [vmem:[#allocation6 + $0x80] sm:$0xff]  ;;  %v91_v1 = vld [vmem:[#allocation6 + $0x88] sm:$0xff] }
  0x38   :  { %v122_v2 = vld [vmem:[#allocation6 + $0x180] sm:$0xff]  ;;  %v781_v3 = vpack.c.bf16 %v91_v1, %v90_v0  ;;  %v123_v4 = vld [vmem:[#allocation6 + $0x188] sm:$0xff]  ;;  %v92_v11 = vld [vmem:[#allocation6 + $0x90] sm:$0xff] }
  0x39   :  { %v74_v5 = vld [vmem:[#allocation6] sm:$0xff]  ;;  %v75_v6 = vld [vmem:[#allocation6 + $0x8] sm:$0xff]  ;;  %v813_v7 = vpack.c.bf16 %v123_v4, %v122_v2  ;;  %v93_v13 = vld [vmem:[#allocation6 + $0x98] sm:$0xff] }
  0x3a   :  { %v783_v8 = vpack.c.bf16 %v75_v6, %v74_v5  ;;  %v106_v9 = vld [vmem:[#allocation6 + $0x100] sm:$0xff]  ;;  %v107_v10 = vld [vmem:[#allocation6 + $0x108] sm:$0xff]  ;;  %782 = vmatprep.subr.bf16.mxu0 %v781_v3  ;;  %v124_v14 = vld [vmem:[#allocation6 + $0x190] sm:$0xff]  ;;  %v785_v16 = vpack.c.bf16 %v93_v13, %v92_v11 }
  0x3b   :  { %v815_v12 = vpack.c.bf16 %v107_v10, %v106_v9  ;;  %v125_v15 = vld [vmem:[#allocation6 + $0x198] sm:$0xff]  ;;  %814 = vmatprep.subr.bf16.mxu1 %v813_v7  ;;  %v76_v18 = vld [vmem:[#allocation6 + $0x10] sm:$0xff]  ;;  %v94_v23 = vld [vmem:[#allocation6 + $0xa0] sm:$0xff] }
  0x3c   :  { %784 = vmatpush3.bf16.msra.mxu0 %v783_v8  ;;  %v817_v17 = vpack.c.bf16 %v125_v15, %v124_v14  ;;  %v77_v19 = vld [vmem:[#allocation6 + $0x18] sm:$0xff]  ;;  %v108_v20 = vld [vmem:[#allocation6 + $0x110] sm:$0xff]  ;;  %v95_v24 = vld [vmem:[#allocation6 + $0xa8] sm:$0xff] }
  0x3d   :  { %816 = vmatpush3.bf16.msra.mxu1 %v815_v12  ;;  %v787_v21 = vpack.c.bf16 %v77_v19, %v76_v18  ;;  %v109_v22 = vld [vmem:[#allocation6 + $0x118] sm:$0xff]  ;;  %786 = vmatprep.subr.bf16.mxu0 %v785_v16  ;;  %v789_v26 = vpack.c.bf16 %v95_v24, %v94_v23  ;;  %v126_v27 = vld [vmem:[#allocation6 + $0x1a0] sm:$0xff]  ;;  %v127_v28 = vld [vmem:[#allocation6 + $0x1a8] sm:$0xff] }
  0x3e   :  { %818 = vmatprep.subr.bf16.mxu1 %v817_v17  ;;  %v819_v25 = vpack.c.bf16 %v109_v22, %v108_v20  ;;  %v78_v29 = vld [vmem:[#allocation6 + $0x20] sm:$0xff]  ;;  %v821_v30 = vpack.c.bf16 %v127_v28, %v126_v27  ;;  %v79_v31 = vld [vmem:[#allocation6 + $0x28] sm:$0xff]  ;;  %v96_v35 = vld [vmem:[#allocation6 + $0xb0] sm:$0xff] }
  0x3f   :  { %v110_v32 = vld [vmem:[#allocation6 + $0x120] sm:$0xff]  ;;  %v111_v33 = vld [vmem:[#allocation6 + $0x128] sm:$0xff]  ;;  %v791_v34 = vpack.c.bf16 %v79_v31, %v78_v29  ;;  %v97_v36 = vld [vmem:[#allocation6 + $0xb8] sm:$0xff] }
  0x40   :  { %788 = vmatpush3.bf16.msra.mxu0 %v787_v21  ;;  %v128_v37 = vld [vmem:[#allocation6 + $0x1b0] sm:$0xff]  ;;  %v823_v38 = vpack.c.bf16 %v111_v33, %v110_v32  ;;  %v793_v39 = vpack.c.bf16 %v97_v36, %v96_v35  ;;  %v129_v40 = vld [vmem:[#allocation6 + $0x1b8] sm:$0xff]  ;;  %v98_v46 = vld [vmem:[#allocation6 + $0xc0] sm:$0xff] }
  0x41   :  { %820 = vmatpush3.bf16.msra.mxu1 %v819_v25  ;;  %790 = vmatprep.subr.bf16.mxu0 %v789_v26  ;;  %v80_v41 = vld [vmem:[#allocation6 + $0x30] sm:$0xff]  ;;  %v81_v42 = vld [vmem:[#allocation6 + $0x38] sm:$0xff]  ;;  %v825_v43 = vpack.c.bf16 %v129_v40, %v128_v37  ;;  %v99_v47 = vld [vmem:[#allocation6 + $0xc8] sm:$0xff] }
  0x42   :  { %822 = vmatprep.subr.bf16.mxu1 %v821_v30  ;;  %v112_v44 = vld [vmem:[#allocation6 + $0x130] sm:$0xff]  ;;  %v113_v45 = vld [vmem:[#allocation6 + $0x138] sm:$0xff]  ;;  %v130_v48 = vld [vmem:[#allocation6 + $0x1c0] sm:$0xff]  ;;  %v795_v50 = vpack.c.bf16 %v81_v42, %v80_v41  ;;  %v797_v52 = vpack.c.bf16 %v99_v47, %v98_v46 }
  0x43   :  { %v131_v49 = vld [vmem:[#allocation6 + $0x1c8] sm:$0xff]  ;;  %v827_v51 = vpack.c.bf16 %v113_v45, %v112_v44  ;;  %v82_v53 = vld [vmem:[#allocation6 + $0x40] sm:$0xff]  ;;  %v100_v58 = vld [vmem:[#allocation6 + $0xd0] sm:$0xff] }
  0x44   :  { %792 = vmatpush3.bf16.msra.mxu0 %v791_v34  ;;  %v83_v54 = vld [vmem:[#allocation6 + $0x48] sm:$0xff]  ;;  %v114_v55 = vld [vmem:[#allocation6 + $0x140] sm:$0xff]  ;;  %v829_v56 = vpack.c.bf16 %v131_v49, %v130_v48  ;;  %v101_v59 = vld [vmem:[#allocation6 + $0xd8] sm:$0xff] }
  0x45   :  { %824 = vmatpush3.bf16.msra.mxu1 %v823_v38  ;;  %794 = vmatprep.subr.bf16.mxu0 %v793_v39  ;;  %v115_v57 = vld [vmem:[#allocation6 + $0x148] sm:$0xff]  ;;  %v132_v60 = vld [vmem:[#allocation6 + $0x1d0] sm:$0xff]  ;;  %v133_v61 = vld [vmem:[#allocation6 + $0x1d8] sm:$0xff]  ;;  %v799_v62 = vpack.c.bf16 %v83_v54, %v82_v53  ;;  %v801_v0 = vpack.c.bf16 %v101_v59, %v100_v58 }
  0x46   :  { %826 = vmatprep.subr.bf16.mxu1 %v825_v43  ;;  %v831_v63 = vpack.c.bf16 %v115_v57, %v114_v55  ;;  %v84_v1 = vld [vmem:[#allocation6 + $0x50] sm:$0xff]  ;;  %v85_v2 = vld [vmem:[#allocation6 + $0x58] sm:$0xff]  ;;  %v833_v4 = vpack.c.bf16 %v133_v61, %v132_v60  ;;  %v102_v6 = vld [vmem:[#allocation6 + $0xe0] sm:$0xff] }
  0x47   :  { %v116_v3 = vld [vmem:[#allocation6 + $0x150] sm:$0xff]  ;;  %v117_v5 = vld [vmem:[#allocation6 + $0x158] sm:$0xff]  ;;  %v103_v7 = vld [vmem:[#allocation6 + $0xe8] sm:$0xff]  ;;  %v803_v10 = vpack.c.bf16 %v85_v2, %v84_v1 }
  0x48   :  { %796 = vmatpush3.bf16.msra.mxu0 %v795_v50  ;;  %v134_v8 = vld [vmem:[#allocation6 + $0x1e0] sm:$0xff]  ;;  %v135_v9 = vld [vmem:[#allocation6 + $0x1e8] sm:$0xff]  ;;  %v835_v13 = vpack.c.bf16 %v117_v5, %v116_v3  ;;  %v805_v14 = vpack.c.bf16 %v103_v7, %v102_v6  ;;  %v69_v17 = vld [vmem:[#allocation3 + $0x18] sm:$0xff] }
  0x49   :  { %828 = vmatpush3.bf16.msra.mxu1 %v827_v51  ;;  %798 = vmatprep.subr.bf16.mxu0 %v797_v52  ;;  %v86_v11 = vld [vmem:[#allocation6 + $0x60] sm:$0xff]  ;;  %v87_v12 = vld [vmem:[#allocation6 + $0x68] sm:$0xff]  ;;  %v837_v18 = vpack.c.bf16 %v135_v9, %v134_v8  ;;  %v104_v20 = vld [vmem:[#allocation6 + $0xf0] sm:$0xff] }
  0x4a   :  { %830 = vmatprep.subr.bf16.mxu1 %v829_v56  ;;  %v118_v15 = vld [vmem:[#allocation6 + $0x160] sm:$0xff]  ;;  %v67_v16 = vld [vmem:[#allocation3 + $0x8] sm:$0xff]  ;;  %v105_v21 = vld [vmem:[#allocation6 + $0xf8] sm:$0xff]  ;;  %336 = vmatprep.mubr.f32.mxu1 %v69_v17  ;;  %v807_v24 = vpack.c.bf16 %v87_v12, %v86_v11 }
  0x4b   :  { %v119_v19 = vld [vmem:[#allocation6 + $0x168] sm:$0xff]  ;;  %266 = vmatprep.mubr.f32.mxu0 %v67_v16  ;;  %v136_v22 = vld [vmem:[#allocation6 + $0x1f0] sm:$0xff]  ;;  %v137_v23 = vld [vmem:[#allocation6 + $0x1f8] sm:$0xff]  ;;  %v809_v26 = vpack.c.bf16 %v105_v21, %v104_v20 }
  0x4c   :  { %800 = vmatpush3.bf16.msra.mxu0 %v799_v62  ;;  %v839_v25 = vpack.c.bf16 %v119_v19, %v118_v15  ;;  %v88_v27 = vld [vmem:[#allocation6 + $0x70] sm:$0xff]  ;;  %v89_v28 = vld [vmem:[#allocation6 + $0x78] sm:$0xff]  ;;  %v841_v30 = vpack.c.bf16 %v137_v23, %v136_v22  ;;  %v154_v32 = vld [vmem:[#allocation6 + $0x280] sm:$0xff] }
  0x4d   :  { %832 = vmatpush3.bf16.msra.mxu1 %v831_v63  ;;  %802 = vmatprep.subr.bf16.mxu0 %v801_v0  ;;  %v120_v29 = vld [vmem:[#allocation6 + $0x170] sm:$0xff]  ;;  %v121_v31 = vld [vmem:[#allocation6 + $0x178] sm:$0xff]  ;;  %v155_v33 = vld [vmem:[#allocation6 + $0x288] sm:$0xff]  ;;  %v811_v36 = vpack.c.bf16 %v89_v28, %v88_v27 }
  0x4e   :  { %834 = vmatprep.subr.bf16.mxu1 %v833_v4  ;;  %v186_v34 = vld [vmem:[#allocation6 + $0x380] sm:$0xff]  ;;  %v187_v35 = vld [vmem:[#allocation6 + $0x388] sm:$0xff]  ;;  %v843_v37 = vpack.c.bf16 %v121_v31, %v120_v29  ;;  %v845_v38 = vpack.c.bf16 %v155_v33, %v154_v32  ;;  %v156_v44 = vld [vmem:[#allocation6 + $0x290] sm:$0xff] }
  0x4f   :  { %v138_v39 = vld [vmem:[#allocation6 + $0x200] sm:$0xff]  ;;  %v139_v40 = vld [vmem:[#allocation6 + $0x208] sm:$0xff]  ;;  %v877_v42 = vpack.c.bf16 %v187_v35, %v186_v34  ;;  %v157_v45 = vld [vmem:[#allocation6 + $0x298] sm:$0xff] }
  0x50   :  { %804 = vmatpush3.bf16.msra.mxu0 %v803_v10  ;;  %v170_v41 = vld [vmem:[#allocation6 + $0x300] sm:$0xff]  ;;  %v171_v43 = vld [vmem:[#allocation6 + $0x308] sm:$0xff]  ;;  %v188_v46 = vld [vmem:[#allocation6 + $0x390] sm:$0xff]  ;;  %v847_v50 = vpack.c.bf16 %v139_v40, %v138_v39  ;;  %v849_v52 = vpack.c.bf16 %v157_v45, %v156_v44 }
  0x51   :  { %836 = vmatpush3.bf16.msra.mxu1 %v835_v13  ;;  %806 = vmatprep.subr.bf16.mxu0 %v805_v14  ;;  %v189_v47 = vld [vmem:[#allocation6 + $0x398] sm:$0xff]  ;;  %v66_v48 = vld [vmem:[#allocation3] sm:$0xff]  ;;  %v68_v49 = vld [vmem:[#allocation3 + $0x10] sm:$0xff]  ;;  %v879_v51 = vpack.c.bf16 %v171_v43, %v170_v41 }
  0x52   :  { %838 = vmatprep.subr.bf16.mxu1 %v837_v18  ;;  %v140_v53 = vld [vmem:[#allocation6 + $0x210] sm:$0xff]  ;;  %v141_v54 = vld [vmem:[#allocation6 + $0x218] sm:$0xff]  ;;  %v881_v56 = vpack.c.bf16 %v189_v47, %v188_v46  ;;  %v158_v58 = vld [vmem:[#allocation6 + $0x2a0] sm:$0xff] }
  0x53   :  { %v172_v55 = vld [vmem:[#allocation6 + $0x310] sm:$0xff]  ;;  %v173_v57 = vld [vmem:[#allocation6 + $0x318] sm:$0xff]  ;;  %v159_v59 = vld [vmem:[#allocation6 + $0x2a8] sm:$0xff]  ;;  %v851_v62 = vpack.c.bf16 %v141_v54, %v140_v53 }
  0x54   :  { %808 = vmatpush3.bf16.msra.mxu0 %v807_v24  ;;  %v190_v60 = vld [vmem:[#allocation6 + $0x3a0] sm:$0xff]  ;;  %v191_v61 = vld [vmem:[#allocation6 + $0x3a8] sm:$0xff]  ;;  %v883_v63 = vpack.c.bf16 %v173_v57, %v172_v55  ;;  %v853_v0 = vpack.c.bf16 %v159_v59, %v158_v58  ;;  %v160_v6 = vld [vmem:[#allocation6 + $0x2b0] sm:$0xff] }
  0x55   :  { %840 = vmatpush3.bf16.msra.mxu1 %v839_v25  ;;  %810 = vmatprep.subr.bf16.mxu0 %v809_v26  ;;  %v142_v1 = vld [vmem:[#allocation6 + $0x220] sm:$0xff]  ;;  %v143_v2 = vld [vmem:[#allocation6 + $0x228] sm:$0xff]  ;;  %v885_v4 = vpack.c.bf16 %v191_v61, %v190_v60  ;;  %v161_v7 = vld [vmem:[#allocation6 + $0x2b8] sm:$0xff] }
  0x56   :  { %842 = vmatprep.subr.bf16.mxu1 %v841_v30  ;;  %v174_v3 = vld [vmem:[#allocation6 + $0x320] sm:$0xff]  ;;  %v175_v5 = vld [vmem:[#allocation6 + $0x328] sm:$0xff]  ;;  %v192_v8 = vld [vmem:[#allocation6 + $0x3b0] sm:$0xff]  ;;  %v855_v10 = vpack.c.bf16 %v143_v2, %v142_v1  ;;  %v857_v12 = vpack.c.bf16 %v161_v7, %v160_v6 }
  0x57   :  { %v193_v9 = vld [vmem:[#allocation6 + $0x3b8] sm:$0xff]  ;;  %v887_v11 = vpack.c.bf16 %v175_v5, %v174_v3  ;;  %v144_v13 = vld [vmem:[#allocation6 + $0x230] sm:$0xff]  ;;  %v162_v18 = vld [vmem:[#allocation6 + $0x2c0] sm:$0xff] }
  0x58   :  { %812 = vmatpush3.bf16.msra.mxu0 %v811_v36  ;;  %v145_v14 = vld [vmem:[#allocation6 + $0x238] sm:$0xff]  ;;  %v176_v15 = vld [vmem:[#allocation6 + $0x330] sm:$0xff]  ;;  %v889_v16 = vpack.c.bf16 %v193_v9, %v192_v8  ;;  %v163_v19 = vld [vmem:[#allocation6 + $0x2c8] sm:$0xff] }
  0x59   :  { %844 = vmatpush3.bf16.msra.mxu1 %v843_v37  ;;  %846 = vmatprep.subr.bf16.mxu0 %v845_v38  ;;  %v177_v17 = vld [vmem:[#allocation6 + $0x338] sm:$0xff]  ;;  %v194_v20 = vld [vmem:[#allocation6 + $0x3c0] sm:$0xff]  ;;  %v195_v21 = vld [vmem:[#allocation6 + $0x3c8] sm:$0xff]  ;;  %v859_v22 = vpack.c.bf16 %v145_v14, %v144_v13  ;;  %v861_v26 = vpack.c.bf16 %v163_v19, %v162_v18 }
  0x5a   :  { %878 = vmatprep.subr.bf16.mxu1 %v877_v42  ;;  %v71_v23 = vld [vmem:[#allocation3 + $0x28] sm:$0xff]  ;;  %v73_v24 = vld [vmem:[#allocation3 + $0x38] sm:$0xff]  ;;  %v891_v25 = vpack.c.bf16 %v177_v17, %v176_v15  ;;  %v146_v27 = vld [vmem:[#allocation6 + $0x240] sm:$0xff]  ;;  %v893_v30 = vpack.c.bf16 %v195_v21, %v194_v20 }
  0x5b   :  { %267 = vmatmul.mubr.f32.vlgmr.msra.gmra.mrb[0].mxu0 %v66_v48  ;;  %v147_v28 = vld [vmem:[#allocation6 + $0x248] sm:$0xff]  ;;  %v178_v29 = vld [vmem:[#allocation6 + $0x340] sm:$0xff]  ;;  %v164_v32 = vld [vmem:[#allocation6 + $0x2d0] sm:$0xff] }
  0x5c   :  { %337 = vmatmul.mubr.f32.vlgmr.msra.gmra.mrb[0].mxu1 %v68_v49  ;;  %848 = vmatpush3.bf16.msra.mxu0 %v847_v50  ;;  %v179_v31 = vld [vmem:[#allocation6 + $0x348] sm:$0xff]  ;;  %v165_v33 = vld [vmem:[#allocation6 + $0x2d8] sm:$0xff]  ;;  %v196_v34 = vld [vmem:[#allocation6 + $0x3d0] sm:$0xff]  ;;  %v863_v36 = vpack.c.bf16 %v147_v28, %v146_v27 }
  0x5d   :  { %880 = vmatpush3.bf16.msra.mxu1 %v879_v51  ;;  %850 = vmatprep.subr.bf16.mxu0 %v849_v52  ;;  %v197_v35 = vld [vmem:[#allocation6 + $0x3d8] sm:$0xff]  ;;  %v895_v37 = vpack.c.bf16 %v179_v31, %v178_v29  ;;  %v865_v38 = vpack.c.bf16 %v165_v33, %v164_v32  ;;  %v148_v39 = vld [vmem:[#allocation6 + $0x250] sm:$0xff]  ;;  %v166_v44 = vld [vmem:[#allocation6 + $0x2e0] sm:$0xff] }
  0x5e   :  { %882 = vmatprep.subr.bf16.mxu1 %v881_v56  ;;  %406 = vmatprep.mubr.f32.mxu0 %v71_v23  ;;  %v149_v40 = vld [vmem:[#allocation6 + $0x258] sm:$0xff]  ;;  %v180_v41 = vld [vmem:[#allocation6 + $0x350] sm:$0xff]  ;;  %v897_v42 = vpack.c.bf16 %v197_v35, %v196_v34  ;;  %v167_v45 = vld [vmem:[#allocation6 + $0x2e8] sm:$0xff] }
  0x5f   :  { %476 = vmatprep.mubr.f32.mxu1 %v73_v24  ;;  %v181_v43 = vld [vmem:[#allocation6 + $0x358] sm:$0xff]  ;;  %v198_v46 = vld [vmem:[#allocation6 + $0x3e0] sm:$0xff]  ;;  %v199_v47 = vld [vmem:[#allocation6 + $0x3e8] sm:$0xff]  ;;  %v867_v48 = vpack.c.bf16 %v149_v40, %v148_v39  ;;  %v869_v50 = vpack.c.bf16 %v167_v45, %v166_v44 }
  0x60   :  { %852 = vmatpush3.bf16.msra.mxu0 %v851_v62  ;;  %v899_v49 = vpack.c.bf16 %v181_v43, %v180_v41  ;;  %v150_v51 = vld [vmem:[#allocation6 + $0x260] sm:$0xff]  ;;  %v151_v52 = vld [vmem:[#allocation6 + $0x268] sm:$0xff]  ;;  %v901_v54 = vpack.c.bf16 %v199_v47, %v198_v46  ;;  %v168_v56 = vld [vmem:[#allocation6 + $0x2f0] sm:$0xff] }
  0x61   :  { %884 = vmatpush3.bf16.msra.mxu1 %v883_v63  ;;  %854 = vmatprep.subr.bf16.mxu0 %v853_v0  ;;  %v182_v53 = vld [vmem:[#allocation6 + $0x360] sm:$0xff]  ;;  %v183_v55 = vld [vmem:[#allocation6 + $0x368] sm:$0xff]  ;;  %v169_v57 = vld [vmem:[#allocation6 + $0x2f8] sm:$0xff]  ;;  %v871_v60 = vpack.c.bf16 %v151_v52, %v150_v51 }
  0x62   :  { %886 = vmatprep.subr.bf16.mxu1 %v885_v4  ;;  %v200_v58 = vld [vmem:[#allocation6 + $0x3f0] sm:$0xff]  ;;  %v201_v59 = vld [vmem:[#allocation6 + $0x3f8] sm:$0xff]  ;;  %v903_v61 = vpack.c.bf16 %v183_v55, %v182_v53  ;;  %v873_v62 = vpack.c.bf16 %v169_v57, %v168_v56  ;;  %v70_v6 = vld [vmem:[#allocation3 + $0x20] sm:$0xff]  ;;  %v1055_v56 = vmov 0.0  }
  0x63   :  { %v152_v63 = vld [vmem:[#allocation6 + $0x270] sm:$0xff]  ;;  %v153_v0 = vld [vmem:[#allocation6 + $0x278] sm:$0xff]  ;;  %v905_v1 = vpack.c.bf16 %v201_v59, %v200_v58  ;;  %v498_v8 = vld [vmem:[#allocation8 + $0x8] sm:$0xff] }
  0x64   :  { %856 = vmatpush3.bf16.msra.mxu0 %v855_v10  ;;  %v184_v2 = vld [vmem:[#allocation6 + $0x370] sm:$0xff]  ;;  %v185_v3 = vld [vmem:[#allocation6 + $0x378] sm:$0xff]  ;;  %v875_v4 = vpack.c.bf16 %v153_v0, %v152_v63  ;;  %v497_v10 = vld [vmem:[#allocation8] sm:$0xff] }
  0x65   :  { %888 = vmatpush3.bf16.msra.mxu1 %v887_v11  ;;  %858 = vmatprep.subr.bf16.mxu0 %v857_v12  ;;  %v907_v5 = vpack.c.bf16 %v185_v3, %v184_v2  ;;  %v72_v7 = vld [vmem:[#allocation3 + $0x30] sm:$0xff]  ;;  %v500_v9 = vld [vmem:[#allocation8 + $0x18] sm:$0xff]  ;;  %v502_v13 = vld [vmem:[#allocation8 + $0x28] sm:$0xff] }
  0x66   :  { %890 = vmatprep.subr.bf16.mxu1 %v889_v16  ;;  %v909_v11 = vpack.c.bf16 %v500_v9, %v498_v8  ;;  %v499_v12 = vld [vmem:[#allocation8 + $0x10] sm:$0xff]  ;;  %v504_v14 = vld [vmem:[#allocation8 + $0x38] sm:$0xff]  ;;  %v501_v17 = vld [vmem:[#allocation8 + $0x20] sm:$0xff] }
  0x67   :  { %v911_v15 = vpack.c.bf16 %v499_v12, %v497_v10  ;;  %v913_v16 = vpack.c.bf16 %v504_v14, %v502_v13  ;;  %v503_v18 = vld [vmem:[#allocation8 + $0x30] sm:$0xff]  ;;  %v506_v19 = vld [vmem:[#allocation8 + $0x48] sm:$0xff]  ;;  %v508_v20 = vld [vmem:[#allocation8 + $0x58] sm:$0xff] }
  0x68   :  { %860 = vmatpush3.bf16.msra.mxu0 %v859_v22  ;;  %v915_v21 = vpack.c.bf16 %v503_v18, %v501_v17  ;;  %v917_v22 = vpack.c.bf16 %v508_v20, %v506_v19  ;;  %v505_v23 = vld [vmem:[#allocation8 + $0x40] sm:$0xff]  ;;  %v507_v24 = vld [vmem:[#allocation8 + $0x50] sm:$0xff]  ;;  %v514_v31 = vld [vmem:[#allocation8 + $0x88] sm:$0xff] }
  0x69   :  { %892 = vmatpush3.bf16.msra.mxu1 %v891_v25  ;;  %862 = vmatprep.subr.bf16.mxu0 %v861_v26  ;;  %v510_v25 = vld [vmem:[#allocation8 + $0x68] sm:$0xff]  ;;  %v512_v26 = vld [vmem:[#allocation8 + $0x78] sm:$0xff]  ;;  %v919_v27 = vpack.c.bf16 %v507_v24, %v505_v23  ;;  %v509_v29 = vld [vmem:[#allocation8 + $0x60] sm:$0xff] }
  0x6a   :  { %894 = vmatprep.subr.bf16.mxu1 %v893_v30  ;;  %v921_v28 = vpack.c.bf16 %v512_v26, %v510_v25  ;;  %v511_v30 = vld [vmem:[#allocation8 + $0x70] sm:$0xff]  ;;  %v516_v32 = vld [vmem:[#allocation8 + $0x98] sm:$0xff]  ;;  %v513_v35 = vld [vmem:[#allocation8 + $0x80] sm:$0xff] }
  0x6b   :  { %v923_v33 = vpack.c.bf16 %v511_v30, %v509_v29  ;;  %v925_v34 = vpack.c.bf16 %v516_v32, %v514_v31  ;;  %v520_v39 = vld [vmem:[#allocation8 + $0xb8] sm:$0xff]  ;;  %v517_v41 = vld [vmem:[#allocation8 + $0xa0] sm:$0xff]  ;;  %v522_v44 = vld [vmem:[#allocation8 + $0xc8] sm:$0xff] }
  0x6c   :  { %864 = vmatpush3.bf16.msra.mxu0 %v863_v36  ;;  %v515_v36 = vld [vmem:[#allocation8 + $0x90] sm:$0xff]  ;;  %v524_v45 = vld [vmem:[#allocation8 + $0xd8] sm:$0xff]  ;;  %v521_v47 = vld [vmem:[#allocation8 + $0xc0] sm:$0xff] }
  0x6d   :  { %896 = vmatpush3.bf16.msra.mxu1 %v895_v37  ;;  %866 = vmatprep.subr.bf16.mxu0 %v865_v38  ;;  %v927_v37 = vpack.c.bf16 %v515_v36, %v513_v35  ;;  %v518_v38 = vld [vmem:[#allocation8 + $0xa8] sm:$0xff]  ;;  %v933_v46 = vpack.c.bf16 %v524_v45, %v522_v44  ;;  %v528_v51 = vld [vmem:[#allocation8 + $0xf8] sm:$0xff]  ;;  %v525_v53 = vld [vmem:[#allocation8 + $0xe0] sm:$0xff] }
  0x6e   :  { %898 = vmatprep.subr.bf16.mxu1 %v897_v42  ;;  %v929_v40 = vpack.c.bf16 %v520_v39, %v518_v38  ;;  %v519_v42 = vld [vmem:[#allocation8 + $0xb0] sm:$0xff]  ;;  %v529_v14 = vld [vmem:[%s1145_s4] sm:$0x3] }
  0x6f   :  { %v931_v43 = vpack.c.bf16 %v519_v42, %v517_v41 }
  0x70   :  { %868 = vmatpush3.bf16.msra.mxu0 %v867_v48  ;;  %v523_v48 = vld [vmem:[#allocation8 + $0xd0] sm:$0xff] }
  0x71   :  { %900 = vmatpush3.bf16.msra.mxu1 %v899_v49  ;;  %870 = vmatprep.subr.bf16.mxu0 %v869_v50  ;;  %v935_v49 = vpack.c.bf16 %v523_v48, %v521_v47  ;;  %v526_v50 = vld [vmem:[#allocation8 + $0xe8] sm:$0xff] }
  0x72   :  { %902 = vmatprep.subr.bf16.mxu1 %v901_v54  ;;  %v937_v52 = vpack.c.bf16 %v528_v51, %v526_v50  ;;  %v527_v54 = vld [vmem:[#allocation8 + $0xf0] sm:$0xff] }
  0x73   :  { %v939_v55 = vpack.c.bf16 %v527_v54, %v525_v53 }
  0x74   :  { %872 = vmatpush3.bf16.msra.mxu0 %v871_v60 }
  0x75   :  { %904 = vmatpush3.bf16.msra.mxu1 %v903_v61  ;;  %874 = vmatprep.subr.bf16.mxu0 %v873_v62 }
  0x76   :  { %906 = vmatprep.subr.bf16.mxu1 %v905_v1 }
  0x78   :  { %876 = vmatpush3.bf16.msra.mxu0 %v875_v4 }
  0x79   :  { %908 = vmatpush3.bf16.msra.mxu1 %v907_v5  ;;  %910 = vmatprep.subr.bf16.mxu0 %v909_v11  ;;  %v531_v11 = vlaneseq }
  0x7b   :  { %407 = vmatmul.mubr.f32.vlgmr.msra.gmra.mrb[2].mxu0 %v70_v6  ;;  %v532_v12 = vshrl.u32 %v531_v11, 7 }
  0x7c   :  { %477 = vmatmul.mubr.f32.vlgmr.msra.gmra.mrb[2].mxu1 %v72_v7  ;;  %912 = vmatpush1.bf16.msra.mxu0 %v911_v15  ;;  %v640_v7 = vld [vmem:[%s1143_s2] ss:$0 sm:$0xff]  ;;  %s1056_s2 = smov [#allocation9]  }
  0x7d   :  { %914 = vmatprep.subr.bf16.mxu0 %v913_v16  ;;  %605 = vmatprep.mubr.f32.mxu0 %v1055_v56  ;;  %v533_v13 = vsub.s32 0, %v532_v12  ;;  %v537_v15 = vsub.s32 1, %v532_v12  ;;  %s630_s4 = sshll.u32 %s1056_s2, 4  ;;  %s631_s4 = int_to_ptr.vmem [resolvable:$true] %s630_s4 }
  0x7e   :  { %s1020_s9 = scalar_lea.vmem %s631_s4, 256  ;;  %p1025_p11 = scmp.lt.s32.totalorder %s631_s4, %s631_s4 }
  0x7f   :  { %v534_v16 = vrot.slane %v529_v14, %v533_v13  ;;  %v538_v17 = vrot.slane %v529_v14, %v537_v15  ;;  %p1021_p10 = scmp.ne.s32.totalorder %s631_s4, %s1020_s9  ;;  %p1026_p12 = scmp.lt.s32.totalorder %s1020_s9, %s1020_s9 }
  0x80   :  { %916 = vmatpush1.bf16.msra.mxu0 %v915_v21 }
  0x81   :  { %918 = vmatprep.subr.bf16.mxu0 %v917_v22  ;;  %p1027_p13 = por %p1026_p12, %p1025_p11 }
  0x83   :  { %p1028_p0 = pnand %p1027_p13, %p1021_p10 }
  0x84   :  { %920 = vmatpush1.bf16.msra.mxu0 %v919_v27 }
  0x85   :  { %922 = vmatprep.subr.bf16.mxu0 %v921_v28 }
  0x88   :  { %924 = vmatpush1.bf16.msra.mxu0 %v923_v33 }
  0x89   :  { %926 = vmatprep.subr.bf16.mxu0 %v925_v34 }
  0x8c   :  { %928 = vmatpush1.bf16.msra.mxu0 %v927_v37 }
  0x8d   :  { %930 = vmatprep.subr.bf16.mxu0 %v929_v40 }
  0x90   :  { %932 = vmatpush1.bf16.msra.mxu0 %v931_v43 }
  0x91   :  { %934 = vmatprep.subr.bf16.mxu0 %v933_v46 }
  0x94   :  { %936 = vmatpush1.bf16.msra.mxu0 %v935_v49 }
  0x95   :  { %938 = vmatprep.subr.bf16.mxu0 %v937_v52 }
  0x98   :  { %940 = vmatpush1.bf16.msra.mxu0 %v939_v55 }
 0x12e   :  { %v673_v57 = vpop.f32.mrb[0].mxu0 }
 0x12f   :  { %v708_v58 = vpop.f32.mrb[0].mxu1  ;;  %v674_v59 = vpop.f32.mrb[1].mxu0 }
 0x130   :  { %v675_v60 = vadd.f32 %v674_v59, %v673_v57  ;;  %v709_v61 = vpop.f32.mrb[1].mxu1 }
 0x131   :  { %v710_v62 = vadd.f32 %v709_v61, %v708_v58 }
 0x133   :  { %v339_v63 = vadd.f32 %v710_v62, %v675_v60 }
 0x14e   :  { %v743_v0 = vpop.f32.mrb[2].mxu0 }
 0x14f   :  { %v744_v1 = vpop.f32.mrb[3].mxu0  ;;  %v778_v2 = vpop.f32.mrb[2].mxu1 }
 0x150   :  { %v745_v3 = vadd.f32 %v744_v1, %v743_v0  ;;  %v779_v4 = vpop.f32.mrb[3].mxu1 }
 0x151   :  { %v780_v5 = vadd.f32 %v779_v4, %v778_v2 }
 0x152   :  { %v409_v6 = vadd.f32 %v745_v3, %v339_v63 }
 0x154   :  { %v479_v8 = vadd.f32 %v780_v5, %v409_v6 }
 0x156   :  { %v495_v9 = vadd.f32 %v640_v7, %v479_v8 }
 0x158   :  { %v496_v10 = vmax.f32 %v495_v9, 0.0 }
 0x15a   :  { %606 = vmatmul.mubr.f32.vlgmr.msra.gmra.mrb[4].mxu0 %v496_v10 }
 0x22d   :  { %v607_v18 = vpop.f32.mrb[4].mxu0 }
 0x22e   :  { %v608_v19 = vadd.f32 %v607_v18, %v534_v16  ;;  %v609_v20 = vpop.f32.mrb[5].mxu0 }
 0x22f   :  { %v610_v21 = vadd.f32 %v609_v20, %v538_v17 }
 0x230   :  { %621 = vst [vmem:[#allocation9] sm:$0xff] %v608_v19 }
 0x231   :  { %612 = vmax.xlane.f32.xlu0 %v610_v21 }
 0x2be   :  { %v613_v22 = vpop.xlane.xlu0 %612 }
 0x2bf   :  { %v614_v23 = vsub.f32 %v610_v21, %v613_v22 }
 0x2c1   :  { %v615_v24 = vmul.f32 1.442695, %v614_v23 }
 0x2c3   :  { %950 = vpow2.f32 %v615_v24 }
 0x2cd   :  { %v951_v25 = vpop.eup %950 }
 0x2ce   :  { %617 = vadd.xlane.f32.xlu0 %v951_v25 }
 0x35b   :  { %v618_v26 = vpop.xlane.xlu0 %617 }
 0x35c   :  { %952 = vrcp.f32 %v618_v26 }
 0x366   :  { %v953_v27 = vpop.eup %952 }
 0x367   :  { %v620_v28 = vmul.f32 %v953_v27, %v951_v25 }
 0x369   :  { %v622_v29 = vadd.f32 1e-06, %v620_v28 }
 0x36b   :  { %623 = vst [vmem:[#allocation9 + $0x8] sm:$0xff] %v622_v29 }
 0x36c   :  { %1031 = shalt.err (!%p1028_p0)
}
 0x36d   :  { %s1032_s12 = scalar_lea.hbm %s1146_s5, 256 }
 0x36e   :  { %p1033_p1 = scmp.ne.s32.totalorder %s1146_s5, %s1032_s12  ;;  %p1036_p2 = scmp.lt.u32.totalorder %s1032_s12, %s1146_s5 }
 0x370   :  { %p1038_p3 = pnand %p1036_p2, %p1033_p1 }
 0x372   :  { %1041 = shalt.err (!%p1038_p3)
}
 0x373   :  { %633 = dma.vmem_to_hbm [thread:$0]  %s631_s4, 256, %s1146_s5, [#allocation5]  }
 0x374   :  { %1046 = dma.done.wait [#allocation5], 256  }
 0x375   :  { %1047 = vsyncadd [#allocation5], 4294967040 }
 0x376   :  { %637 = vsyncpa [#allocation4], 1 }
 0x377   :  { %638 = vsyncpa [#allocation7], 1 }
 0x378   :  { %639 = vsyncpa [#allocation5], 1 }

</bundles_post_ra>
